<compile_context>
chip_gen: v7x
topology: tpu7x:2x2x1
jax: 0.10.0
libtpu: 0.0.40
codegen_flags: <defaults>
</compile_context>

<pallas_src>
import functools

import jax
import jax.numpy as jnp
from jax.experimental import pallas as pl
from jax.experimental.pallas import tpu as pltpu

_MiB = 1024 * 1024

_SINGLE_BUFFER_RESIDENT_OK = None  # resolved once, on the first full-K call


# ----------------------------------------------------------------------------- hardware info
def _vmem_budgets():
    """(tile VMEM budget, vmem_limit_bytes) for the current TPU generation."""
    vmem_cap = 64 * _MiB  # conservative default (v7x per-TensorCore VMEM)
    try:
        vmem_cap = int(pltpu.get_tpu_info().vmem_capacity_bytes)
    except Exception:
        pass
    if vmem_cap >= 96 * _MiB:          # v5e / v6e: 128 MiB physical VMEM
        return 72 * _MiB, 96 * _MiB
    return 36 * _MiB, 48 * _MiB        # v7x: 64 MiB per TC — keep the ceiling conservative


def _num_tensorcores():
    """2 on dual-TensorCore chips (v4 / v5p / v7x); 1 on v5e / v6e."""
    try:
        kind = getattr(jax.devices()[0], "device_kind", "").lower().replace(" ", "")
        if any(tag in kind for tag in ("v7", "tpu7", "v4", "v5p")):
            return 2
    except Exception:
        pass
    return 1


# ----------------------------------------------------------------------------- tiling helpers
def _round_up(x, m):
    return ((x + m - 1) // m) * m


def _pick_tk(kp, ncp, in_bytes, budget):
    """K tile for the K-tiled path: largest 128-multiple divisor of kp whose weight tile
    (double-buffered) uses at most ~half the VMEM budget."""
    for tk in (2048, 1024, 512, 256, 128):
        if kp % tk == 0 and 2 * ncp * tk * in_bytes <= budget // 2:
            return tk
    return 128


def _derive_tile_b(batch, tk, ncp, in_bytes, align, budget, with_acc, num_tc):
    """Largest aligned batch tile fitting the VMEM budget (megacore-aware)."""
    tile_b = min(512, _round_up(batch, align))
    if num_tc > 1 and batch > align:
        # Dual-TC chips only: make sure the 'parallel' batch axis has >= num_tc tiles.
        tile_b = min(tile_b, max(align, _round_up(pl.cdiv(batch, num_tc), align)))

    def vmem_need(tb):
        return (2 * tb * tk * in_bytes          # x tile, double-buffered
                + 2 * ncp * tk * in_bytes       # weight (counted 2x even if Buffered(1))
                + 2 * tb * ncp * 4              # output tile, double-buffered
                + (tb * ncp * 4 if with_acc else 0)   # f32 accumulator (K-tiled path only)
                + 2 * ncp * 4)                  # bias

    while tile_b > align and vmem_need(tile_b) > budget:
        tile_b = max(align, _round_up(tile_b // 2, align))

    if num_tc > 1:
        # Keep both TensorCores equally loaded: nudge to an even number of batch tiles.
        n_tiles = pl.cdiv(batch, tile_b)
        if n_tiles > 1 and n_tiles % num_tc:
            tile_b = max(align, _round_up(pl.cdiv(batch, _round_up(n_tiles, num_tc)), align))
    return tile_b


# ----------------------------------------------------------------------------- param prep
def prepare_params(weight, bias, *, compute_dtype=None, precision=None, _force_k_tiled=False):
    """One-time parameter preparation (hoisted out of the per-call path).

    weight: (num_class, num_dim) in PyTorch nn.Linear layout; bias: (num_class,).
    compute_dtype: e.g. jnp.bfloat16 — recommended on v5e / v6e / v7x when accuracy allows
    (halves x / W HBM traffic; MXU accumulates in f32).
    precision: optional lax.Precision for the in-kernel dot (e.g. HIGHEST for strict f32
    parity with torch; the extra passes hide under the HBM-bound roofline).
    """
    num_class, num_dim = weight.shape
    assert bias.shape == (num_class,)
    if compute_dtype is not None:
        weight = weight.astype(compute_dtype)
    in_bytes = jnp.dtype(weight.dtype).itemsize
    align = 16 if in_bytes == 2 else 8

    ncp = _round_up(num_class, 128)            # lane-dense output / full MXU N
    budget, vmem_limit = _vmem_budgets()

    # Full-K (weight resident, fetched from HBM exactly once) whenever it fits the VMEM
    # budget alongside a reasonable (128-row) batch tile; otherwise tile K and accumulate.
    nominal_tb = 128
    resident_need = (2 * ncp * num_dim * in_bytes + 2 * ncp * 4
                     + 2 * nominal_tb * num_dim * in_bytes + 2 * nominal_tb * ncp * 4)
    full_k = (not _force_k_tiled) and resident_need <= budget

    kp = num_dim if full_k else _round_up(num_dim, 128)
    tk = kp if full_k else _pick_tk(kp, ncp, in_bytes, budget)

    # Pad + transpose ONCE: (num_class, num_dim) -> (kp, ncp). Plain [K,N] operand for the MXU.
    w_t = jnp.zeros((kp, ncp), weight.dtype).at[:num_dim, :num_class].set(weight.T)
    b2d = jnp.zeros((1, ncp), jnp.float32).at[:, :num_class].set(
        bias.astype(jnp.float32)[None, :])

    return {
        "weight_t": w_t, "bias2d": b2d,
        "num_class": num_class, "num_dim": num_dim,
        "kp": kp, "tk": tk, "full_k": full_k,
        "align": align, "budget": budget, "vmem_limit": vmem_limit,
        "precision": precision,
    }


# ----------------------------------------------------------------------------- kernels
def _fullk_kernel(x_ref, w_ref, b_ref, o_ref, *, precision):
    # Whole weight is VMEM-resident: single MXU contraction, no accumulator scratch.
    acc = jnp.dot(x_ref[...], w_ref[...],
                  preferred_element_type=jnp.float32, precision=precision)
    o_ref[...] = (acc + b_ref[...]).astype(o_ref.dtype)


def _ktiled_kernel(x_ref, w_ref, b_ref, o_ref, acc_ref, *, precision):
    k = pl.program_id(1)

    @pl.when(k == 0)
    def _():
        # Fold the bias into the accumulator init (saves a full-tile add in the epilogue).
        acc_ref[...] = jnp.broadcast_to(b_ref[...], acc_ref.shape)

    acc_ref[...] += jnp.dot(x_ref[...], w_ref[...],
                            preferred_element_type=jnp.float32, precision=precision)

    @pl.when(k == pl.num_programs(1) - 1)
    def _():
        o_ref[...] = acc_ref[...].astype(o_ref.dtype)


# ----------------------------------------------------------------------------- pallas wrappers
@functools.partial(
    jax.jit,
    static_argnames=("tile_b", "out_dtype", "precision", "vmem_limit", "single_buffer"))
def _fullk_call(x, w_t, b2d, *, tile_b, out_dtype, precision, vmem_limit, single_buffer):
    batch, kp = x.shape
    ncp = w_t.shape[1]
    # Constant-index blocks: request single buffering to halve their VMEM footprint.
    resident = {"pipeline_mode": pl.Buffered(1)} if single_buffer else {}
    return pl.pallas_call(
        functools.partial(_fullk_kernel, precision=precision),
        out_shape=jax.ShapeDtypeStruct((batch, ncp), out_dtype),
        grid_spec=pltpu.PrefetchScalarGridSpec(
            num_scalar_prefetch=0,
            grid=(pl.cdiv(batch, tile_b),),          # ragged last tile handled by masking
            in_specs=[
                pl.BlockSpec((tile_b, kp), lambda i: (i, 0)),             # x
                pl.BlockSpec((kp, ncp), lambda i: (0, 0), **resident),    # W^T (resident)
                pl.BlockSpec((1, ncp), lambda i: (0, 0), **resident),     # bias
            ],
            out_specs=pl.BlockSpec((tile_b, ncp), lambda i: (i, 0)),
        ),
        compiler_params=pltpu.CompilerParams(
            dimension_semantics=("parallel",),
            vmem_limit_bytes=vmem_limit,
        ),
    )(x, w_t, b2d)


@functools.partial(
    jax.jit,
    static_argnames=("tile_b", "tk", "out_dtype", "precision", "vmem_limit"))
def _ktiled_call(x, w_t, b2d, *, tile_b, tk, out_dtype, precision, vmem_limit):
    batch, kp = x.shape
    ncp = w_t.shape[1]
    return pl.pallas_call(
        functools.partial(_ktiled_kernel, precision=precision),
        out_shape=jax.ShapeDtypeStruct((batch, ncp), out_dtype),
        grid_spec=pltpu.PrefetchScalarGridSpec(
            num_scalar_prefetch=0,
            grid=(pl.cdiv(batch, tile_b), kp // tk),  # K (reduction) innermost
            in_specs=[
                pl.BlockSpec((tile_b, tk), lambda i, k: (i, k)),   # x
                pl.BlockSpec((tk, ncp), lambda i, k: (k, 0)),      # W^T tile
                pl.BlockSpec((1, ncp), lambda i, k: (0, 0)),       # bias
            ],
            out_specs=pl.BlockSpec((tile_b, ncp), lambda i, k: (i, 0)),
            scratch_shapes=[pltpu.VMEM((tile_b, ncp), jnp.float32)],
        ),
        compiler_params=pltpu.CompilerParams(
            dimension_semantics=("parallel", "arbitrary"),
            vmem_limit_bytes=vmem_limit,
        ),
    )(x, w_t, b2d)


# ----------------------------------------------------------------------------- public forward
def logistic_regression_forward(x, params, *, tile_b=None):
    """logits = x @ weight.T + bias (same semantics as torch.nn.Linear).

    x: (batch, num_dim); params: from prepare_params(). Returns (batch, num_class) in x's
    original dtype. No per-call padding/copies of x or the weight in the common path.
    """
    global _SINGLE_BUFFER_RESIDENT_OK
    batch, num_dim = x.shape
    assert num_dim == params["num_dim"], "x feature dim must match the prepared weight"
    out_dtype = x.dtype
    w_t, b2d = params["weight_t"], params["bias2d"]
    if x.dtype != w_t.dtype:
        x = x.astype(w_t.dtype)

    kp, full_k = params["kp"], params["full_k"]
    if kp != num_dim:
        # Rare edge case: K-tiled path with num_dim not a multiple of 128.
        # TODO(synk): fold this pad into the kernel (zero-masked partial K block) to avoid
        # the extra HBM copy of x.
        x = jnp.pad(x, ((0, 0), (0, kp - num_dim)))

    ncp = w_t.shape[1]
    in_bytes = jnp.dtype(w_t.dtype).itemsize
    if tile_b is None:
        tile_b = _derive_tile_b(batch, params["tk"], ncp, in_bytes, params["align"],
                                params["budget"], with_acc=not full_k,
                                num_tc=_num_tensorcores())

    common = dict(tile_b=tile_b, out_dtype=out_dtype,
                  precision=params["precision"], vmem_limit=params["vmem_limit"])
    if full_k:
        if _SINGLE_BUFFER_RESIDENT_OK is None:
            try:
                out = _fullk_call(x, w_t, b2d, single_buffer=True, **common)
                jax.block_until_ready(out)
                _SINGLE_BUFFER_RESIDENT_OK = True
            except Exception:
                _SINGLE_BUFFER_RESIDENT_OK = False
                out = _fullk_call(x, w_t, b2d, single_buffer=False, **common)
        else:
            out = _fullk_call(x, w_t, b2d, single_buffer=_SINGLE_BUFFER_RESIDENT_OK, **common)
    else:
        out = _ktiled_call(x, w_t, b2d, tk=params["tk"], **common)

    if ncp != params["num_class"]:
        out = out[:, :params["num_class"]]
    return out


# ----------------------------------------------------------------------------- demo / test
if __name__ == "__main__":
    key = jax.random.PRNGKey(0)
    k_x, k_w, k_b, k_x2, k_w2, k_b2 = jax.random.split(key, 6)

    batch, num_dim, num_class = 8, 32, 16
    x = jax.random.normal(k_x, (batch, num_dim), jnp.float32)
    bound = 1.0 / float(num_dim) ** 0.5
    weight = jax.random.uniform(k_w, (num_class, num_dim), jnp.float32, -bound, bound)
    bias = jax.random.uniform(k_b, (num_class,), jnp.float32, -bound, bound)
    ref = jnp.dot(x, weight.T, precision=jax.lax.Precision.HIGHEST) + bias

    # f32 path; params prepared once (padding / transpose hoisted out of the forward).
    params = prepare_params(weight, bias)
    logits = logistic_regression_forward(x, params)
    jax.block_until_ready(logits)
    assert logits.shape == (batch, num_class)
    assert jnp.allclose(logits, ref, atol=2e-3, rtol=2e-3), "f32 mismatch vs reference"

    # Ragged batch: exercises the masked partial last tile (no per-call x padding copies).
    xr = jax.random.normal(k_x2, (batch + 3, num_dim), jnp.float32)
    refr = jnp.dot(xr, weight.T, precision=jax.lax.Precision.HIGHEST) + bias
    logits_r = logistic_regression_forward(xr, params)
    jax.block_until_ready(logits_r)
    assert logits_r.shape == (batch + 3, num_class)
    assert jnp.allclose(logits_r, refr, atol=2e-3, rtol=2e-3), "ragged-batch mismatch"

    # K-tiled accumulator path (forced; normally only used when W cannot stay VMEM-resident).
    num_dim2 = 384
    x2 = jax.random.normal(k_x2, (10, num_dim2), jnp.float32)
    w2 = jax.random.uniform(k_w2, (num_class, num_dim2), jnp.float32, -0.05, 0.05)
    b2 = jax.random.uniform(k_b2, (num_class,), jnp.float32, -0.05, 0.05)
    params_kt = prepare_params(w2, b2, _force_k_tiled=True)
    ref2 = jnp.dot(x2, w2.T, precision=jax.lax.Precision.HIGHEST) + b2
    out2 = logistic_regression_forward(x2, params_kt)
    jax.block_until_ready(out2)
    assert jnp.allclose(out2, ref2, atol=2e-3, rtol=2e-3), "K-tiled mismatch vs reference"

    # bf16-compute / f32-accumulate path (recommended on v5e / v6e / v7x when accuracy allows).
    params_bf16 = prepare_params(weight, bias, compute_dtype=jnp.bfloat16)
    logits_bf16 = logistic_regression_forward(x, params_bf16)
    jax.block_until_ready(logits_bf16)
    assert jnp.allclose(logits_bf16, ref, atol=5e-2, rtol=5e-2), "bf16 mismatch vs reference"

    print("KERNEL_OK")
</pallas_src>

<mosaic_0001>
module attributes {stable_mosaic.version = 11 : i64} {
  func.func @_fullk_kernel(%arg0: i32, %arg1: memref<8x32xf32, #tpu.memory_space<vmem>>, %arg2: memref<32x128xf32, #tpu.memory_space<vmem>>, %arg3: memref<1x128xf32, #tpu.memory_space<vmem>>, %arg4: memref<8x128xf32, #tpu.memory_space<vmem>>) attributes {dimension_semantics = [#tpu.dimension_semantics<parallel>], iteration_bounds = array<i64: 1>, scalar_prefetch = 0 : i64, scratch_operands = 0 : i64, tpu.core_type = #tpu.core_type<tc>, window_params = [{transform_indices = @transform_0, window_bounds = array<i64: 8, 32>}, {pipeline_mode = #tpu.pipeline_mode<synchronous>, transform_indices = @transform_1, window_bounds = array<i64: 32, 128>}, {pipeline_mode = #tpu.pipeline_mode<synchronous>, transform_indices = @transform_2, window_bounds = array<i64: 1, 128>}, {transform_indices = @transform_3, window_bounds = array<i64: 8, 128>}]} {
    %c0 = arith.constant 0 : index
    %c0_0 = arith.constant 0 : index
    %0 = vector.load %arg1[%c0, %c0_0] : memref<8x32xf32, #tpu.memory_space<vmem>>, vector<8x32xf32>
    %c0_1 = arith.constant 0 : index
    %c0_2 = arith.constant 0 : index
    %1 = vector.load %arg2[%c0_1, %c0_2] : memref<32x128xf32, #tpu.memory_space<vmem>>, vector<32x128xf32>
    %cst = arith.constant dense<0.000000e+00> : vector<8x128xf32>
    %2 = tpu.matmul %0, %1, %cst {dimension_numbers = #tpu.dot_dimension_numbers<[1], [0], [0], [1], [0, 0, 1, 1], [], []>} : vector<8x32xf32>, vector<32x128xf32>, vector<8x128xf32> -> vector<8x128xf32>
    %c0_3 = arith.constant 0 : index
    %c0_4 = arith.constant 0 : index
    %3 = vector.load %arg3[%c0_3, %c0_4] : memref<1x128xf32, #tpu.memory_space<vmem>>, vector<1x128xf32>
    %4 = vector.broadcast %3 : vector<1x128xf32> to vector<8x128xf32>
    %5 = arith.addf %2, %4 : vector<8x128xf32>
    %c0_5 = arith.constant 0 : index
    %c0_6 = arith.constant 0 : index
    %6 = vector.load %arg4[%c0_5, %c0_6] : memref<8x128xf32, #tpu.memory_space<vmem>>, vector<8x128xf32>
    tpu.vector_store %arg4[%c0_5, %c0_6], %5 {strides = array<i32>} : memref<8x128xf32, #tpu.memory_space<vmem>>, vector<8x128xf32>,
    return
  }
  func.func @transform_0(%arg0: i32) -> (i32, i32) {
    %c0_i32 = arith.constant 0 : i32
    %c0_i32_0 = arith.constant 0 : i32
    return %arg0, %c0_i32 : i32, i32
  }
  func.func @transform_1(%arg0: i32) -> (i32, i32) {
    %c0_i32 = arith.constant 0 : i32
    %c0_i32_0 = arith.constant 0 : i32
    %c0_i32_1 = arith.constant 0 : i32
    return %c0_i32, %c0_i32_0 : i32, i32
  }
  func.func @transform_2(%arg0: i32) -> (i32, i32) {
    %c0_i32 = arith.constant 0 : i32
    %c0_i32_0 = arith.constant 0 : i32
    %c0_i32_1 = arith.constant 0 : i32
    return %c0_i32, %c0_i32_0 : i32, i32
  }
  func.func @transform_3(%arg0: i32) -> (i32, i32) {
    %c0_i32 = arith.constant 0 : i32
    %c0_i32_0 = arith.constant 0 : i32
    return %arg0, %c0_i32 : i32, i32
  }
}

module attributes {stable_mosaic.version = 11 : i64} {
  func.func @_fullk_kernel(%arg0: i32, %arg1: memref<8x32xf32, #tpu.memory_space<vmem>>, %arg2: memref<32x128xf32, #tpu.memory_space<vmem>>, %arg3: memref<1x128xf32, #tpu.memory_space<vmem>>, %arg4: memref<8x128xf32, #tpu.memory_space<vmem>>) attributes {dimension_semantics = [#tpu.dimension_semantics<parallel>], iteration_bounds = array<i64: 1>, scalar_prefetch = 0 : i64, scratch_operands = 0 : i64, tpu.core_type = #tpu.core_type<tc>, window_params = [{transform_indices = @transform_0, window_bounds = array<i64: 8, 32>}, {pipeline_mode = #tpu.pipeline_mode<synchronous>, transform_indices = @transform_1, window_bounds = array<i64: 32, 128>}, {pipeline_mode = #tpu.pipeline_mode<synchronous>, transform_indices = @transform_2, window_bounds = array<i64: 1, 128>}, {transform_indices = @transform_3, window_bounds = array<i64: 8, 128>}]} {
    %c0 = arith.constant 0 : index
    %c0_0 = arith.constant 0 : index
    %0 = vector.load %arg1[%c0, %c0_0] : memref<8x32xf32, #tpu.memory_space<vmem>>, vector<8x32xf32>
    %c0_1 = arith.constant 0 : index
    %c0_2 = arith.constant 0 : index
    %1 = vector.load %arg2[%c0_1, %c0_2] : memref<32x128xf32, #tpu.memory_space<vmem>>, vector<32x128xf32>
    %cst = arith.constant dense<0.000000e+00> : vector<8x128xf32>
    %2 = tpu.matmul %0, %1, %cst {dimension_numbers = #tpu.dot_dimension_numbers<[1], [0], [0], [1], [0, 0, 1, 1], [], []>} : vector<8x32xf32>, vector<32x128xf32>, vector<8x128xf32> -> vector<8x128xf32>
    %c0_3 = arith.constant 0 : index
    %c0_4 = arith.constant 0 : index
    %3 = vector.load %arg3[%c0_3, %c0_4] : memref<1x128xf32, #tpu.memory_space<vmem>>, vector<1x128xf32>
    %4 = vector.broadcast %3 : vector<1x128xf32> to vector<8x128xf32>
    %5 = arith.addf %2, %4 : vector<8x128xf32>
    %c0_5 = arith.constant 0 : index
    %c0_6 = arith.constant 0 : index
    %6 = vector.load %arg4[%c0_5, %c0_6] : memref<8x128xf32, #tpu.memory_space<vmem>>, vector<8x128xf32>
    tpu.vector_store %arg4[%c0_5, %c0_6], %5 {strides = array<i32>} : memref<8x128xf32, #tpu.memory_space<vmem>>, vector<8x128xf32>,
    return
  }
  func.func @transform_0(%arg0: i32) -> (i32, i32) {
    %c0_i32 = arith.constant 0 : i32
    %c0_i32_0 = arith.constant 0 : i32
    return %arg0, %c0_i32 : i32, i32
  }
  func.func @transform_1(%arg0: i32) -> (i32, i32) {
    %c0_i32 = arith.constant 0 : i32
    %c0_i32_0 = arith.constant 0 : i32
    %c0_i32_1 = arith.constant 0 : i32
    return %c0_i32, %c0_i32_0 : i32, i32
  }
  func.func @transform_2(%arg0: i32) -> (i32, i32) {
    %c0_i32 = arith.constant 0 : i32
    %c0_i32_0 = arith.constant 0 : i32
    %c0_i32_1 = arith.constant 0 : i32
    return %c0_i32, %c0_i32_0 : i32, i32
  }
  func.func @transform_3(%arg0: i32) -> (i32, i32) {
    %c0_i32 = arith.constant 0 : i32
    %c0_i32_0 = arith.constant 0 : i32
    return %arg0, %c0_i32 : i32, i32
  }
}

</mosaic_0001>

<bundles_post_ra>
// kernel: _fullk_call.1
= control target key start
LH: loop header
LB: loop body
LE: loop exit
PB: predicated region body
PF: predicated region fallthrough
CT: control target
= control target key end

     0   :  { %8 = vsyncpa [#allocation3], 0  ;;  %s322_s0 = inlined_call_operand.hbm [shape: f32[8,32], index: 0, kind: input, shape index: {}]   ;;  %s323_s1 = inlined_call_operand.hbm [shape: f32[32,128], index: 1, kind: input, shape index: {}]   ;;  %s324_s2 = inlined_call_operand.vmem [shape: f32[1,128], index: 2, kind: input, shape index: {}]   ;;  %s325_s3 = inlined_call_operand.hbm [shape: f32[8,128], index: 3, kind: output, shape index: {}]  }
   0x1   :  { %9 = vsyncpa [#allocation6], 0 }
   0x2   :  { %10 = vsyncpa [#allocation4], 0  ;;  %s248_s12 = smov [#allocation2]   ;;  %s249_s14 = smov [#allocation5]  }
   0x3   :  { %s17_s13 = sshll.u32 %s248_s12, 4  ;;  %s26_s15 = sshll.u32 %s249_s14, 4  ;;  %s18_s13 = int_to_ptr.vmem [resolvable:$true] %s17_s13  ;;  %s276_s15 = int_to_ptr.vmem [resolvable:$true] %s26_s15 }
   0x4   :  { %s176_s18 = scalar_lea.hbm %s322_s0, 128 }
   0x5   :  { %p177_p0 = scmp.ne.s32.totalorder %s322_s0, %s176_s18  ;;  %p180_p1 = scmp.lt.u32.totalorder %s176_s18, %s322_s0 }
   0x7   :  { %p182_p2 = pnand %p180_p1, %p177_p0 }
   0x9   :  { %185 = shalt.err (!%p182_p2)
}
   0xa   :  { %s186_s23 = scalar_lea.vmem %s18_s13, 128  ;;  %p191_p4 = scmp.lt.s32.totalorder %s18_s13, %s18_s13 }
   0xb   :  { %p187_p3 = scmp.ne.s32.totalorder %s18_s13, %s186_s23  ;;  %p192_p5 = scmp.lt.s32.totalorder %s186_s23, %s186_s23 }
   0xd   :  { %p193_p6 = por %p192_p5, %p191_p4 }
   0xf   :  { %p194_p7 = pnand %p193_p6, %p187_p3 }
  0x11   :  { %197 = shalt.err (!%p194_p7)
}
  0x12   :  { %20 = dma.hbm_to_vmem [thread:$0]  %s322_s0, 128, %s18_s13, [#allocation3]  }
  0x13   :  { %s198_s28 = scalar_lea.hbm %s323_s1, 512 }
  0x14   :  { %p199_p8 = scmp.ne.s32.totalorder %s323_s1, %s198_s28  ;;  %p202_p9 = scmp.lt.u32.totalorder %s198_s28, %s323_s1 }
  0x16   :  { %p204_p10 = pnand %p202_p9, %p199_p8 }
  0x18   :  { %207 = shalt.err (!%p204_p10)
}
  0x19   :  { %s208_s6 = scalar_lea.vmem %s276_s15, 512  ;;  %p213_p12 = scmp.lt.s32.totalorder %s276_s15, %s276_s15 }
  0x1a   :  { %p209_p11 = scmp.ne.s32.totalorder %s276_s15, %s208_s6  ;;  %p214_p13 = scmp.lt.s32.totalorder %s208_s6, %s208_s6 }
  0x1c   :  { %p215_p0 = por %p214_p13, %p213_p12 }
  0x1e   :  { %p216_p1 = pnand %p215_p0, %p209_p11 }
  0x20   :  { %219 = shalt.err (!%p216_p1)
}
  0x21   :  { %s250_s0 = smov 128   ;;  %s251_s7 = smov 8  }
  0x22   :  { %32 = dma.hbm_to_vmem [thread:$0]  %s323_s1, 512, %s276_s15, [#allocation6], %s250_s0, %s250_s0, %s251_s7  }
  0x23   :  { %242 = dma.done.wait [#allocation3], 128  }
  0x24   :  { %243 = vsyncadd [#allocation3], 4294967168 }
  0x25   :  { %244 = dma.done.wait [#allocation6], 512  }
  0x26   :  { %245 = vsyncadd [#allocation6], 4294966784  ;;  %v252_v0 = vmov 0.0|0.0   ;;  %vm253_vm0 = vmmov 0   ;;  %v254_v1 = vmov 0.0   ;;  %v42_v2 = vld [vmem:[#allocation5] sm:$0xff] }
  0x27   :  { %162 = vmatprep.subr.bf16.mxu0 %v252_v0  ;;  %159 = vmatprep.mubr.msk.f32.mxu0 %vm253_vm0, %v254_v1  ;;  %v43_v3 = vld [vmem:[#allocation5 + $0x8] sm:$0xff]  ;;  %v44_v4 = vld [vmem:[#allocation5 + $0x10] sm:$0xff]  ;;  %v45_v6 = vld [vmem:[#allocation5 + $0x18] sm:$0xff]  ;;  %vm53_vm1 = vcmask 261120   ;;  %s255_s11 = smov [#allocation7]  }
  0x28   :  { %v163_v5 = vpack.c.bf16 %v43_v3, %v42_v2  ;;  %v166_v7 = vpack.c.bf16 %v45_v6, %v44_v4  ;;  %v41_v8 = vld [vmem:[#allocation2] sm:$0xff]  ;;  %s134_s12 = sshll.u32 %s255_s11, 4  ;;  %s135_s12 = int_to_ptr.vmem [resolvable:$true] %s134_s12 }
  0x29   :  { %v144_v9 = vld [vmem:[%s324_s2] ss:$0 sm:$0xff]  ;;  %s220_s13 = scalar_lea.vmem %s135_s12, 128  ;;  %p225_p3 = scmp.lt.s32.totalorder %s135_s12, %s135_s12 }
  0x2a   :  { %164 = vmatpush3.bf16.msra.mxu0 %v163_v5  ;;  %p221_p2 = scmp.ne.s32.totalorder %s135_s12, %s220_s13  ;;  %p226_p4 = scmp.lt.s32.totalorder %s220_s13, %s220_s13 }
  0x2b   :  { %165 = vmatprep.subr.bf16.mxu0 %v252_v0 }
  0x2c   :  { %p227_p5 = por %p226_p4, %p225_p3 }
  0x2e   :  { %167 = vmatpush3.bf16.msra.mxu0 %v166_v7  ;;  %p228_p6 = pnand %p227_p5, %p221_p2 }
  0x31   :  { %160 = vmatmul.mubr.msk.f32.vlgmr.msra.gmra.mrb[0].mxu0 %vm53_vm1, %v41_v8 }
 0x104   :  { %v123_v10 = vpop.f32.mrb[0].mxu0 }
 0x105   :  { %v124_v11 = vadd.f32 %v144_v9, %v123_v10  ;;  %v161_v12 = vpop.f32.mrb[1].mxu0 }
 0x107   :  { %127 = vst [vmem:[#allocation7] sm:$0xff] %v124_v11 }
 0x108   :  { %231 = shalt.err (!%p228_p6)
}
 0x109   :  { %s232_s16 = scalar_lea.hbm %s325_s3, 128 }
 0x10a   :  { %p233_p7 = scmp.ne.s32.totalorder %s325_s3, %s232_s16  ;;  %p236_p8 = scmp.lt.u32.totalorder %s232_s16, %s325_s3 }
 0x10c   :  { %p238_p9 = pnand %p236_p8, %p233_p7 }
 0x10e   :  { %241 = shalt.err (!%p238_p9)
}
 0x10f   :  { %137 = dma.vmem_to_hbm [thread:$0]  %s135_s12, 128, %s325_s3, [#allocation4]  }
 0x110   :  { %246 = dma.done.wait [#allocation4], 128  }
 0x111   :  { %247 = vsyncadd [#allocation4], 4294967168 }
 0x112   :  { %141 = vsyncpa [#allocation3], 1 }
 0x113   :  { %142 = vsyncpa [#allocation6], 1 }
 0x114   :  { %143 = vsyncpa [#allocation4], 1 }

// kernel: _fullk_call.1
= control target key start
LH: loop header
LB: loop body
LE: loop exit
PB: predicated region body
PF: predicated region fallthrough
CT: control target
= control target key end

     0   :  { %8 = vsyncpa [#allocation3], 0  ;;  %s322_s0 = inlined_call_operand.hbm [shape: f32[8,32], index: 0, kind: input, shape index: {}]   ;;  %s323_s1 = inlined_call_operand.hbm [shape: f32[32,128], index: 1, kind: input, shape index: {}]   ;;  %s324_s2 = inlined_call_operand.vmem [shape: f32[1,128], index: 2, kind: input, shape index: {}]   ;;  %s325_s3 = inlined_call_operand.hbm [shape: f32[8,128], index: 3, kind: output, shape index: {}]  }
   0x1   :  { %9 = vsyncpa [#allocation6], 0 }
   0x2   :  { %10 = vsyncpa [#allocation4], 0  ;;  %s248_s12 = smov [#allocation2]   ;;  %s249_s14 = smov [#allocation5]  }
   0x3   :  { %s17_s13 = sshll.u32 %s248_s12, 4  ;;  %s26_s15 = sshll.u32 %s249_s14, 4  ;;  %s18_s13 = int_to_ptr.vmem [resolvable:$true] %s17_s13  ;;  %s276_s15 = int_to_ptr.vmem [resolvable:$true] %s26_s15 }
   0x4   :  { %s176_s18 = scalar_lea.hbm %s322_s0, 128 }
   0x5   :  { %p177_p0 = scmp.ne.s32.totalorder %s322_s0, %s176_s18  ;;  %p180_p1 = scmp.lt.u32.totalorder %s176_s18, %s322_s0 }
   0x7   :  { %p182_p2 = pnand %p180_p1, %p177_p0 }
   0x9   :  { %185 = shalt.err (!%p182_p2)
}
   0xa   :  { %s186_s23 = scalar_lea.vmem %s18_s13, 128  ;;  %p191_p4 = scmp.lt.s32.totalorder %s18_s13, %s18_s13 }
   0xb   :  { %p187_p3 = scmp.ne.s32.totalorder %s18_s13, %s186_s23  ;;  %p192_p5 = scmp.lt.s32.totalorder %s186_s23, %s186_s23 }
   0xd   :  { %p193_p6 = por %p192_p5, %p191_p4 }
   0xf   :  { %p194_p7 = pnand %p193_p6, %p187_p3 }
  0x11   :  { %197 = shalt.err (!%p194_p7)
}
  0x12   :  { %20 = dma.hbm_to_vmem [thread:$0]  %s322_s0, 128, %s18_s13, [#allocation3]  }
  0x13   :  { %s198_s28 = scalar_lea.hbm %s323_s1, 512 }
  0x14   :  { %p199_p8 = scmp.ne.s32.totalorder %s323_s1, %s198_s28  ;;  %p202_p9 = scmp.lt.u32.totalorder %s198_s28, %s323_s1 }
  0x16   :  { %p204_p10 = pnand %p202_p9, %p199_p8 }
  0x18   :  { %207 = shalt.err (!%p204_p10)
}
  0x19   :  { %s208_s6 = scalar_lea.vmem %s276_s15, 512  ;;  %p213_p12 = scmp.lt.s32.totalorder %s276_s15, %s276_s15 }
  0x1a   :  { %p209_p11 = scmp.ne.s32.totalorder %s276_s15, %s208_s6  ;;  %p214_p13 = scmp.lt.s32.totalorder %s208_s6, %s208_s6 }
  0x1c   :  { %p215_p0 = por %p214_p13, %p213_p12 }
  0x1e   :  { %p216_p1 = pnand %p215_p0, %p209_p11 }
  0x20   :  { %219 = shalt.err (!%p216_p1)
}
  0x21   :  { %s250_s0 = smov 128   ;;  %s251_s7 = smov 8  }
  0x22   :  { %32 = dma.hbm_to_vmem [thread:$0]  %s323_s1, 512, %s276_s15, [#allocation6], %s250_s0, %s250_s0, %s251_s7  }
  0x23   :  { %242 = dma.done.wait [#allocation3], 128  }
  0x24   :  { %243 = vsyncadd [#allocation3], 4294967168 }
  0x25   :  { %244 = dma.done.wait [#allocation6], 512  }
  0x26   :  { %245 = vsyncadd [#allocation6], 4294966784  ;;  %v252_v0 = vmov 0.0|0.0   ;;  %vm253_vm0 = vmmov 0   ;;  %v254_v1 = vmov 0.0   ;;  %v42_v2 = vld [vmem:[#allocation5] sm:$0xff] }
  0x27   :  { %162 = vmatprep.subr.bf16.mxu0 %v252_v0  ;;  %159 = vmatprep.mubr.msk.f32.mxu0 %vm253_vm0, %v254_v1  ;;  %v43_v3 = vld [vmem:[#allocation5 + $0x8] sm:$0xff]  ;;  %v44_v4 = vld [vmem:[#allocation5 + $0x10] sm:$0xff]  ;;  %v45_v6 = vld [vmem:[#allocation5 + $0x18] sm:$0xff]  ;;  %vm53_vm1 = vcmask 261120   ;;  %s255_s11 = smov [#allocation7]  }
  0x28   :  { %v163_v5 = vpack.c.bf16 %v43_v3, %v42_v2  ;;  %v166_v7 = vpack.c.bf16 %v45_v6, %v44_v4  ;;  %v41_v8 = vld [vmem:[#allocation2] sm:$0xff]  ;;  %s134_s12 = sshll.u32 %s255_s11, 4  ;;  %s135_s12 = int_to_ptr.vmem [resolvable:$true] %s134_s12 }
  0x29   :  { %v144_v9 = vld [vmem:[%s324_s2] ss:$0 sm:$0xff]  ;;  %s220_s13 = scalar_lea.vmem %s135_s12, 128  ;;  %p225_p3 = scmp.lt.s32.totalorder %s135_s12, %s135_s12 }
  0x2a   :  { %164 = vmatpush3.bf16.msra.mxu0 %v163_v5  ;;  %p221_p2 = scmp.ne.s32.totalorder %s135_s12, %s220_s13  ;;  %p226_p4 = scmp.lt.s32.totalorder %s220_s13, %s220_s13 }
  0x2b   :  { %165 = vmatprep.subr.bf16.mxu0 %v252_v0 }
  0x2c   :  { %p227_p5 = por %p226_p4, %p225_p3 }
  0x2e   :  { %167 = vmatpush3.bf16.msra.mxu0 %v166_v7  ;;  %p228_p6 = pnand %p227_p5, %p221_p2 }
  0x31   :  { %160 = vmatmul.mubr.msk.f32.vlgmr.msra.gmra.mrb[0].mxu0 %vm53_vm1, %v41_v8 }
 0x104   :  { %v123_v10 = vpop.f32.mrb[0].mxu0 }
 0x105   :  { %v124_v11 = vadd.f32 %v144_v9, %v123_v10  ;;  %v161_v12 = vpop.f32.mrb[1].mxu0 }
 0x107   :  { %127 = vst [vmem:[#allocation7] sm:$0xff] %v124_v11 }
 0x108   :  { %231 = shalt.err (!%p228_p6)
}
 0x109   :  { %s232_s16 = scalar_lea.hbm %s325_s3, 128 }
 0x10a   :  { %p233_p7 = scmp.ne.s32.totalorder %s325_s3, %s232_s16  ;;  %p236_p8 = scmp.lt.u32.totalorder %s232_s16, %s325_s3 }
 0x10c   :  { %p238_p9 = pnand %p236_p8, %p233_p7 }
 0x10e   :  { %241 = shalt.err (!%p238_p9)
}
 0x10f   :  { %137 = dma.vmem_to_hbm [thread:$0]  %s135_s12, 128, %s325_s3, [#allocation4]  }
 0x110   :  { %246 = dma.done.wait [#allocation4], 128  }
 0x111   :  { %247 = vsyncadd [#allocation4], 4294967168 }
 0x112   :  { %141 = vsyncpa [#allocation3], 1 }
 0x113   :  { %142 = vsyncpa [#allocation6], 1 }
 0x114   :  { %143 = vsyncpa [#allocation4], 1 }

</bundles_post_ra>
